<compile_context>
chip_gen: v7x
topology: tpu7x:2x2x1
jax: 0.10.0
libtpu: 0.0.40
codegen_flags: <defaults>
</compile_context>

<pallas_src>
import jax
import jax.numpy as jnp
from jax import lax
from jax.experimental import pallas as pl
from jax.experimental.pallas import tpu as pltpu


def critic_kernel(s_ref, a_ref, w1s_ref, w1a_ref, b1_ref, w2_ref, b2_ref,
                  w3_ref, b3_ref, o_ref):
    # Layer 1 (concat fused): h = state @ W1_obs + action @ W1_act + b1, ReLU.
    # Two small-K MXU pushes into the same f32 accumulator (no concat materialized).
    h = jnp.dot(s_ref[...], w1s_ref[...], preferred_element_type=jnp.float32)
    h = h + jnp.dot(a_ref[...], w1a_ref[...], preferred_element_type=jnp.float32)
    h = jnp.maximum(h + b1_ref[...], 0.0)

    # Layer 2: Linear + ReLU (cast activation to the matmul dtype; epilogue stays f32).
    h = jnp.dot(h.astype(w2_ref.dtype), w2_ref[...],
                preferred_element_type=jnp.float32)
    h = jnp.maximum(h + b2_ref[...], 0.0)

    # Output layer (out_dim = 1), lane-dense: w3 (1,H) contracted against h (tile,H) on its
    # last dim (A @ B^T on the MXU) -> (1, tile) row; bias rides the SMEM scalar path.
    out_row = lax.dot_general(w3_ref[...], h, (((1,), (1,)), ((), ())),
                              preferred_element_type=jnp.float32)
    o_ref[...] = (out_row + b3_ref[0, 0]).astype(o_ref.dtype)


def _pick_batch_tile(batch, max_tile=4096):
    """Batch tile size.

    Large tiles amortize the ~0.35us/grid-step overhead; pl.cdiv handles the ragged last
    block.  Tiles are either the full batch (single block) or a multiple of 128 so all
    BlockSpecs (including the lane-dense (1, tile) output block) satisfy the (8,128) rule.
    For big, 256-aligned batches we emit >= 2 steps so v7x's two TensorCores both get work.
    """
    assert max_tile % 128 == 0
    if batch > max_tile:
        return max_tile                      # cdiv grid; last block padded by Pallas
    if batch >= 1024 and batch % 256 == 0:
        return batch // 2                    # 2 parallel steps -> both v7x TCs busy
    return batch                             # one full-extent block


def critic_forward(state, action, params, *, matmul_dtype=jnp.bfloat16, max_tile=4096):
    """state: (B, obs_dim), action: (B, action_dim)  -> (B, 1) float32."""
    w1, b1, w2, b2, w3, b3 = params
    B, obs_dim = state.shape
    act_dim = action.shape[1]
    H = w1.shape[1]

    # Fused concat: split W1 (tiny, jit-folded).  Matmul operands go to matmul_dtype
    # (bf16 halves the activation DMA bytes; in a fused training graph the producer can
    # emit bf16 directly so the cast below disappears).
    w1_obs = w1[:obs_dim, :].astype(matmul_dtype)
    w1_act = w1[obs_dim:, :].astype(matmul_dtype)
    w2_c = w2.astype(matmul_dtype)
    s = state.astype(matmul_dtype)
    a = action.astype(matmul_dtype)
    w3_row = w3.reshape(1, H)            # f32: output layer / epilogue stays f32
    b3_s = b3.reshape(1, 1)              # (1,1) scalar -> SMEM

    tm = _pick_batch_tile(B, max_tile)
    grid_m = pl.cdiv(B, tm)
    padded = grid_m * tm                 # lane-dense output row, sliced back to B below

    tiled = lambda shape: pl.BlockSpec(shape, lambda i: (i, 0))      # batch-tiled inputs
    resident = lambda shape: pl.BlockSpec(shape, lambda i: (0, 0))   # weights stay VMEM-resident

    itm = jnp.dtype(matmul_dtype).itemsize
    flops = 2 * B * (obs_dim * H + act_dim * H + H * H + H)
    bytes_accessed = (itm * (state.size + action.size + w1.size + w2.size)
                      + 4 * (b1.size + b2.size + w3.size + b3.size + B))

    out = pl.pallas_call(
        critic_kernel,
        out_shape=jax.ShapeDtypeStruct((1, padded), jnp.float32),
        grid=(grid_m,),
        in_specs=[
            tiled((tm, obs_dim)),
            tiled((tm, act_dim)),
            resident(w1_obs.shape),
            resident(w1_act.shape),
            resident(b1.shape),
            resident(w2_c.shape),
            resident(b2.shape),
            resident(w3_row.shape),
            pl.BlockSpec(memory_space=pltpu.MemorySpace.SMEM),   # b3 scalar
        ],
        out_specs=pl.BlockSpec((1, tm), lambda i: (0, i)),
        compiler_params=pltpu.CompilerParams(
            dimension_semantics=("parallel",)),
        cost_estimate=pl.CostEstimate(
            flops=flops, transcendentals=0, bytes_accessed=bytes_accessed),
    )(s, a, w1_obs, w1_act, b1, w2_c, b2, w3_row, b3_s)

    return out.reshape(-1)[:B].reshape(B, 1)


def init_params(key, obs_dim, action_dim, hidden_dim, hidden_depth):
    """Deterministic synthetic init (PyTorch Linear-style uniform)."""
    # TODO(synk): kernel is specialized to hidden_depth == 2 (the Critic default used here)
    #             and do_regularization=False (no BatchNorm1d); arbitrary depth needs a loop.
    assert hidden_depth == 2
    in_dim = obs_dim + action_dim
    k1, k2, k3, k4, k5, k6 = jax.random.split(key, 6)

    def lin(kw, kb, fan_in, fan_out):
        bound = 1.0 / jnp.sqrt(fan_in)
        w = jax.random.uniform(kw, (fan_in, fan_out), jnp.float32, -bound, bound)
        b = jax.random.uniform(kb, (1, fan_out), jnp.float32, -bound, bound)
        return w, b

    w1, b1 = lin(k1, k2, in_dim, hidden_dim)
    w2, b2 = lin(k3, k4, hidden_dim, hidden_dim)
    w3, b3 = lin(k5, k6, hidden_dim, 1)
    return (w1, b1, w2, b2, w3, b3)


def critic_reference(state, action, params, matmul_dtype=jnp.float32):
    """Pure-JAX reference with the same dtype policy as the kernel."""
    w1, b1, w2, b2, w3, b3 = params
    x = jnp.concatenate([state, action], axis=1).astype(matmul_dtype)
    h = jnp.dot(x, w1.astype(matmul_dtype), preferred_element_type=jnp.float32)
    h = jnp.maximum(h + b1, 0.0)
    h = jnp.dot(h.astype(matmul_dtype), w2.astype(matmul_dtype),
                preferred_element_type=jnp.float32)
    h = jnp.maximum(h + b2, 0.0)
    return jnp.dot(h, w3) + b3


if __name__ == "__main__":
    obs_dim, action_dim, hidden_dim, hidden_depth = 24, 8, 32, 2
    batch = 8

    key = jax.random.PRNGKey(0)
    ks, ka, kp = jax.random.split(key, 3)
    state = jax.random.normal(ks, (batch, obs_dim), jnp.float32)
    action = jax.random.normal(ka, (batch, action_dim), jnp.float32)
    params = init_params(kp, obs_dim, action_dim, hidden_dim, hidden_depth)

    # 1) f32 matmul path: matches the torch-module math tightly.
    out_f32 = jax.block_until_ready(
        critic_forward(state, action, params, matmul_dtype=jnp.float32))
    ref_f32 = critic_reference(state, action, params, jnp.float32)
    assert out_f32.shape == (batch, 1)
    assert jnp.allclose(out_f32, ref_f32, atol=1e-5, rtol=1e-5)

    # 2) bf16 matmul path (default): tight vs a bf16-cast reference, loose vs f32 reference.
    out_bf16 = jax.block_until_ready(critic_forward(state, action, params))
    ref_bf16 = critic_reference(state, action, params, jnp.bfloat16)
    assert out_bf16.shape == (batch, 1)
    assert jnp.allclose(out_bf16, ref_bf16, atol=1e-4, rtol=1e-4)
    assert jnp.allclose(out_bf16, ref_f32, atol=5e-2, rtol=5e-2)

    # 3) multi-step cdiv grid with a ragged (padded) last block, still at small shapes.
    batch2 = 300
    ks2, ka2 = jax.random.split(jax.random.PRNGKey(1), 2)
    state2 = jax.random.normal(ks2, (batch2, obs_dim), jnp.float32)
    action2 = jax.random.normal(ka2, (batch2, action_dim), jnp.float32)
    out2 = jax.block_until_ready(
        critic_forward(state2, action2, params, matmul_dtype=jnp.float32, max_tile=128))
    ref2 = critic_reference(state2, action2, params, jnp.float32)
    assert out2.shape == (batch2, 1)
    assert jnp.allclose(out2, ref2, atol=1e-5, rtol=1e-5)

    print("KERNEL_OK")
</pallas_src>

<mosaic_0001>
module attributes {stable_mosaic.version = 11 : i64} {
  func.func @critic_kernel(%arg0: i32, %arg1: memref<8x24xf32, #tpu.memory_space<vmem>>, %arg2: memref<8x8xf32, #tpu.memory_space<vmem>>, %arg3: memref<24x32xf32, #tpu.memory_space<vmem>>, %arg4: memref<8x32xf32, #tpu.memory_space<vmem>>, %arg5: memref<1x32xf32, #tpu.memory_space<vmem>>, %arg6: memref<32x32xf32, #tpu.memory_space<vmem>>, %arg7: memref<1x32xf32, #tpu.memory_space<vmem>>, %arg8: memref<1x32xf32, #tpu.memory_space<vmem>>, %arg9: memref<1x1xf32, #tpu.memory_space<smem>>, %arg10: memref<1x8xf32, #tpu.memory_space<vmem>>) attributes {dimension_semantics = [#tpu.dimension_semantics<parallel>], iteration_bounds = array<i64: 1>, scalar_prefetch = 0 : i64, scratch_operands = 0 : i64, tpu.core_type = #tpu.core_type<tc>, window_params = [{transform_indices = @transform_0, window_bounds = array<i64: 8, 24>}, {transform_indices = @transform_1, window_bounds = array<i64: 8, 8>}, {pipeline_mode = #tpu.pipeline_mode<synchronous>, transform_indices = @transform_2, window_bounds = array<i64: 24, 32>}, {pipeline_mode = #tpu.pipeline_mode<synchronous>, transform_indices = @transform_3, window_bounds = array<i64: 8, 32>}, {pipeline_mode = #tpu.pipeline_mode<synchronous>, transform_indices = @transform_4, window_bounds = array<i64: 1, 32>}, {pipeline_mode = #tpu.pipeline_mode<synchronous>, transform_indices = @transform_5, window_bounds = array<i64: 32, 32>}, {pipeline_mode = #tpu.pipeline_mode<synchronous>, transform_indices = @transform_6, window_bounds = array<i64: 1, 32>}, {pipeline_mode = #tpu.pipeline_mode<synchronous>, transform_indices = @transform_7, window_bounds = array<i64: 1, 32>}, {transform_indices = @transform_8, window_bounds = array<i64: 1, 1>}, {transform_indices = @transform_9, window_bounds = array<i64: 1, 8>}]} {
    %c0 = arith.constant 0 : index
    %c0_0 = arith.constant 0 : index
    %0 = vector.load %arg1[%c0, %c0_0] : memref<8x24xf32, #tpu.memory_space<vmem>>, vector<8x24xf32>
    %c0_1 = arith.constant 0 : index
    %c0_2 = arith.constant 0 : index
    %1 = vector.load %arg3[%c0_1, %c0_2] : memref<24x32xf32, #tpu.memory_space<vmem>>, vector<24x32xf32>
    %cst = arith.constant dense<0.000000e+00> : vector<8x32xf32>
    %2 = tpu.matmul %0, %1, %cst {dimension_numbers = #tpu.dot_dimension_numbers<[1], [0], [0], [1], [0, 0, 1, 1], [], []>} : vector<8x24xf32>, vector<24x32xf32>, vector<8x32xf32> -> vector<8x32xf32>
    %c0_3 = arith.constant 0 : index
    %c0_4 = arith.constant 0 : index
    %3 = vector.load %arg2[%c0_3, %c0_4] : memref<8x8xf32, #tpu.memory_space<vmem>>, vector<8x8xf32>
    %c0_5 = arith.constant 0 : index
    %c0_6 = arith.constant 0 : index
    %4 = vector.load %arg4[%c0_5, %c0_6] : memref<8x32xf32, #tpu.memory_space<vmem>>, vector<8x32xf32>
    %cst_7 = arith.constant dense<0.000000e+00> : vector<8x32xf32>
    %5 = tpu.matmul %3, %4, %cst_7 {dimension_numbers = #tpu.dot_dimension_numbers<[1], [0], [0], [1], [0, 0, 1, 1], [], []>} : vector<8x8xf32>, vector<8x32xf32>, vector<8x32xf32> -> vector<8x32xf32>
    %6 = arith.addf %2, %5 : vector<8x32xf32>
    %c0_8 = arith.constant 0 : index
    %c0_9 = arith.constant 0 : index
    %7 = vector.load %arg5[%c0_8, %c0_9] : memref<1x32xf32, #tpu.memory_space<vmem>>, vector<1x32xf32>
    %8 = vector.broadcast %7 : vector<1x32xf32> to vector<8x32xf32>
    %9 = arith.addf %6, %8 : vector<8x32xf32>
    %cst_10 = arith.constant 0.000000e+00 : f32
    %10 = vector.broadcast %cst_10 : f32 to vector<8x32xf32>
    %11 = arith.maximumf %9, %10 : vector<8x32xf32>
    %c0_11 = arith.constant 0 : index
    %c0_12 = arith.constant 0 : index
    %12 = vector.load %arg6[%c0_11, %c0_12] : memref<32x32xf32, #tpu.memory_space<vmem>>, vector<32x32xf32>
    %cst_13 = arith.constant dense<0.000000e+00> : vector<8x32xf32>
    %13 = tpu.matmul %11, %12, %cst_13 {dimension_numbers = #tpu.dot_dimension_numbers<[1], [0], [0], [1], [0, 0, 1, 1], [], []>} : vector<8x32xf32>, vector<32x32xf32>, vector<8x32xf32> -> vector<8x32xf32>
    %c0_14 = arith.constant 0 : index
    %c0_15 = arith.constant 0 : index
    %14 = vector.load %arg7[%c0_14, %c0_15] : memref<1x32xf32, #tpu.memory_space<vmem>>, vector<1x32xf32>
    %15 = vector.broadcast %14 : vector<1x32xf32> to vector<8x32xf32>
    %16 = arith.addf %13, %15 : vector<8x32xf32>
    %cst_16 = arith.constant 0.000000e+00 : f32
    %17 = vector.broadcast %cst_16 : f32 to vector<8x32xf32>
    %18 = arith.maximumf %16, %17 : vector<8x32xf32>
    %c0_17 = arith.constant 0 : index
    %c0_18 = arith.constant 0 : index
    %19 = vector.load %arg8[%c0_17, %c0_18] : memref<1x32xf32, #tpu.memory_space<vmem>>, vector<1x32xf32>
    %cst_19 = arith.constant dense<0.000000e+00> : vector<1x8xf32>
    %20 = tpu.matmul %19, %18, %cst_19 {dimension_numbers = #tpu.dot_dimension_numbers<[1], [1], [0], [0], [0, 0, 1, 0], [], []>} : vector<1x32xf32>, vector<8x32xf32>, vector<1x8xf32> -> vector<1x8xf32>
    %c0_20 = arith.constant 0 : index
    %c0_21 = arith.constant 0 : index
    %21 = memref.load %arg9[%c0_20, %c0_21] : memref<1x1xf32, #tpu.memory_space<smem>>
    %22 = vector.broadcast %21 : f32 to vector<1x8xf32>
    %23 = arith.addf %20, %22 : vector<1x8xf32>
    %c0_22 = arith.constant 0 : index
    %c0_23 = arith.constant 0 : index
    %24 = vector.load %arg10[%c0_22, %c0_23] : memref<1x8xf32, #tpu.memory_space<vmem>>, vector<1x8xf32>
    tpu.vector_store %arg10[%c0_22, %c0_23], %23 {strides = array<i32>} : memref<1x8xf32, #tpu.memory_space<vmem>>, vector<1x8xf32>,
    return
  }
  func.func @transform_0(%arg0: i32) -> (i32, i32) {
    %c0_i32 = arith.constant 0 : i32
    %c0_i32_0 = arith.constant 0 : i32
    return %arg0, %c0_i32 : i32, i32
  }
  func.func @transform_1(%arg0: i32) -> (i32, i32) {
    %c0_i32 = arith.constant 0 : i32
    %c0_i32_0 = arith.constant 0 : i32
    return %arg0, %c0_i32 : i32, i32
  }
  func.func @transform_2(%arg0: i32) -> (i32, i32) {
    %c0_i32 = arith.constant 0 : i32
    %c0_i32_0 = arith.constant 0 : i32
    %c0_i32_1 = arith.constant 0 : i32
    return %c0_i32, %c0_i32_0 : i32, i32
  }
  func.func @transform_3(%arg0: i32) -> (i32, i32) {
    %c0_i32 = arith.constant 0 : i32
    %c0_i32_0 = arith.constant 0 : i32
    %c0_i32_1 = arith.constant 0 : i32
    return %c0_i32, %c0_i32_0 : i32, i32
  }
  func.func @transform_4(%arg0: i32) -> (i32, i32) {
    %c0_i32 = arith.constant 0 : i32
    %c0_i32_0 = arith.constant 0 : i32
    %c0_i32_1 = arith.constant 0 : i32
    return %c0_i32, %c0_i32_0 : i32, i32
  }
  func.func @transform_5(%arg0: i32) -> (i32, i32) {
    %c0_i32 = arith.constant 0 : i32
    %c0_i32_0 = arith.constant 0 : i32
    %c0_i32_1 = arith.constant 0 : i32
    return %c0_i32, %c0_i32_0 : i32, i32
  }
  func.func @transform_6(%arg0: i32) -> (i32, i32) {
    %c0_i32 = arith.constant 0 : i32
    %c0_i32_0 = arith.constant 0 : i32
    %c0_i32_1 = arith.constant 0 : i32
    return %c0_i32, %c0_i32_0 : i32, i32
  }
  func.func @transform_7(%arg0: i32) -> (i32, i32) {
    %c0_i32 = arith.constant 0 : i32
    %c0_i32_0 = arith.constant 0 : i32
    %c0_i32_1 = arith.constant 0 : i32
    return %c0_i32, %c0_i32_0 : i32, i32
  }
  func.func @transform_8(%arg0: i32) -> (i32, i32) {
    %c0_i32 = arith.constant 0 : i32
    %c0_i32_0 = arith.constant 0 : i32
    %c0_i32_1 = arith.constant 0 : i32
    return %c0_i32, %c0_i32_0 : i32, i32
  }
  func.func @transform_9(%arg0: i32) -> (i32, i32) {
    %c0_i32 = arith.constant 0 : i32
    %c0_i32_0 = arith.constant 0 : i32
    return %c0_i32, %arg0 : i32, i32
  }
}

</mosaic_0001>

<bundles_post_ra>
// kernel: tpu_custom_call.1
= control target key start
LH: loop header
LB: loop body
LE: loop exit
PB: predicated region body
PF: predicated region fallthrough
CT: control target
= control target key end

     0   :  { %15 = vsyncpa [#allocation4], 0  ;;  %s758_s0 = inlined_call_operand.hbm [shape: f32[8,24], index: 0, kind: input, shape index: {}]   ;;  %s759_s1 = inlined_call_operand.hbm [shape: f32[8,8], index: 1, kind: input, shape index: {}]   ;;  %s760_s2 = inlined_call_operand.hbm [shape: f32[24,32], index: 2, kind: input, shape index: {}]   ;;  %s761_s3 = inlined_call_operand.vmem [shape: f32[8,32], index: 3, kind: input, shape index: {}]   ;;  %s762_s4 = inlined_call_operand.vmem [shape: f32[1,32], index: 4, kind: input, shape index: {}]   ;;  %s763_s5 = inlined_call_operand.hbm [shape: f32[32,32], index: 5, kind: input, shape index: {}]   ;;  %s764_s6 = inlined_call_operand.vmem [shape: f32[1,32], index: 6, kind: input, shape index: {}]   ;;  %s765_s7 = inlined_call_operand.vmem [shape: f32[1,32], index: 7, kind: input, shape index: {}]   ;;  %s766_s8 = inlined_call_operand.<no memory space> [shape: f32[1,1], index: 8, kind: input, shape index: {}]   ;;  %s767_s9 = inlined_call_operand.hbm [shape: f32[1,8], index: 9, kind: output, shape index: {}]  }
   0x1   :  { %16 = vsyncpa [#allocation7], 0 }
   0x2   :  { %17 = vsyncpa [#allocation10], 0 }
   0x3   :  { %18 = vsyncpa [#allocation5], 0  ;;  %s619_s30 = smov [#allocation6]   ;;  %s620_s11 = smov [#allocation3]  }
   0x4   :  { %s35_s10 = sshll.u32 %s619_s30, 4  ;;  %s25_s12 = sshll.u32 %s620_s11, 4  ;;  %s36_s10 = int_to_ptr.vmem [resolvable:$true] %s35_s10  ;;  %s26_s12 = int_to_ptr.vmem [resolvable:$true] %s25_s12 }
   0x5   :  { %s501_s15 = scalar_lea.hbm %s759_s1, 128 }
   0x6   :  { %p502_p0 = scmp.ne.s32.totalorder %s759_s1, %s501_s15  ;;  %p505_p1 = scmp.lt.u32.totalorder %s501_s15, %s759_s1 }
   0x8   :  { %p507_p2 = pnand %p505_p1, %p502_p0 }
   0xa   :  { %510 = shalt.err (!%p507_p2)
}
   0xb   :  { %s511_s20 = scalar_lea.vmem %s36_s10, 128  ;;  %p516_p4 = scmp.lt.s32.totalorder %s36_s10, %s36_s10 }
   0xc   :  { %p512_p3 = scmp.ne.s32.totalorder %s36_s10, %s511_s20  ;;  %p517_p5 = scmp.lt.s32.totalorder %s511_s20, %s511_s20 }
   0xe   :  { %p518_p6 = por %p517_p5, %p516_p4 }
  0x10   :  { %p519_p7 = pnand %p518_p6, %p512_p3 }
  0x12   :  { %522 = shalt.err (!%p519_p7)
}
  0x13   :  { %38 = dma.hbm_to_vmem [thread:$0]  %s759_s1, 128, %s36_s10, [#allocation7]  }
  0x14   :  { %s523_s25 = scalar_lea.hbm %s758_s0, 128 }
  0x15   :  { %p524_p8 = scmp.ne.s32.totalorder %s758_s0, %s523_s25  ;;  %p527_p9 = scmp.lt.u32.totalorder %s523_s25, %s758_s0 }
  0x17   :  { %p529_p10 = pnand %p527_p9, %p524_p8 }
  0x19   :  { %532 = shalt.err (!%p529_p10)
}
  0x1a   :  { %s533_s30 = scalar_lea.vmem %s26_s12, 128  ;;  %p538_p12 = scmp.lt.s32.totalorder %s26_s12, %s26_s12 }
  0x1b   :  { %p534_p11 = scmp.ne.s32.totalorder %s26_s12, %s533_s30  ;;  %p539_p13 = scmp.lt.s32.totalorder %s533_s30, %s533_s30 }
  0x1d   :  { %p540_p0 = por %p539_p13, %p538_p12 }
  0x1f   :  { %p541_p1 = pnand %p540_p0, %p534_p11 }
  0x21   :  { %544 = shalt.err (!%p541_p1)
}
  0x22   :  { %28 = dma.hbm_to_vmem [thread:$0]  %s758_s0, 128, %s26_s12, [#allocation4]  }
  0x23   :  { %s621_s11 = smov [#allocation8]   ;;  %s545_s16 = scalar_lea.hbm %s760_s2, 384 }
  0x24   :  { %s44_s13 = sshll.u32 %s621_s11, 4  ;;  %p546_p2 = scmp.ne.s32.totalorder %s760_s2, %s545_s16  ;;  %s45_s13 = int_to_ptr.vmem [resolvable:$true] %s44_s13 }
  0x25   :  { %p549_p3 = scmp.lt.u32.totalorder %s545_s16, %s760_s2 }
  0x27   :  { %p551_p4 = pnand %p549_p3, %p546_p2 }
  0x29   :  { %554 = shalt.err (!%p551_p4)
}
  0x2a   :  { %s555_s21 = scalar_lea.vmem %s45_s13, 384  ;;  %p560_p6 = scmp.lt.s32.totalorder %s45_s13, %s45_s13 }
  0x2b   :  { %p556_p5 = scmp.ne.s32.totalorder %s45_s13, %s555_s21  ;;  %p561_p7 = scmp.lt.s32.totalorder %s555_s21, %s555_s21 }
  0x2d   :  { %p562_p8 = por %p561_p7, %p560_p6 }
  0x2f   :  { %p563_p9 = pnand %p562_p8, %p556_p5 }
  0x31   :  { %566 = shalt.err (!%p563_p9)
}
  0x32   :  { %s622_s0 = smov 128   ;;  %s623_s12 = smov 8  }
  0x33   :  { %50 = dma.hbm_to_vmem [thread:$0]  %s760_s2, 384, %s45_s13, [#allocation7], %s622_s0, %s622_s0, %s623_s12  }
  0x34   :  { %s624_s24 = smov [#allocation9]   ;;  %s567_s28 = scalar_lea.hbm %s763_s5, 512 }
  0x35   :  { %s60_s25 = sshll.u32 %s624_s24, 4  ;;  %p568_p10 = scmp.ne.s32.totalorder %s763_s5, %s567_s28  ;;  %s61_s25 = int_to_ptr.vmem [resolvable:$true] %s60_s25 }
  0x36   :  { %p571_p11 = scmp.lt.u32.totalorder %s567_s28, %s763_s5 }
  0x38   :  { %p573_p12 = pnand %p571_p11, %p568_p10 }
  0x3a   :  { %576 = shalt.err (!%p573_p12)
}
  0x3b   :  { %s577_s11 = scalar_lea.vmem %s61_s25, 512  ;;  %p582_p0 = scmp.lt.s32.totalorder %s61_s25, %s61_s25 }
  0x3c   :  { %p578_p13 = scmp.ne.s32.totalorder %s61_s25, %s577_s11  ;;  %p583_p1 = scmp.lt.s32.totalorder %s577_s11, %s577_s11 }
  0x3e   :  { %p584_p2 = por %p583_p1, %p582_p0 }
  0x40   :  { %p585_p3 = pnand %p584_p2, %p578_p13 }
  0x42   :  { %588 = shalt.err (!%p585_p3)
}
  0x43   :  { %66 = dma.hbm_to_vmem [thread:$0]  %s763_s5, 512, %s61_s25, [#allocation10], %s622_s0, %s622_s0, %s623_s12  }
  0x44   :  { %611 = dma.done.wait [#allocation4], 128  }
  0x45   :  { %612 = vsyncadd [#allocation4], 4294967168 }
  0x46   :  { %613 = dma.done.wait [#allocation7], 512  }
  0x47   :  { %614 = vsyncadd [#allocation7], 4294966784 }
  0x48   :  { %615 = dma.done.wait [#allocation10], 512  }
  0x49   :  { %616 = vsyncadd [#allocation10], 4294966784  ;;  %v625_v0 = vmov 0.0|0.0   ;;  %v626_v1 = vmov 0.0   ;;  %vm627_vm0 = vmmov 0   ;;  %vm91_vm1 = vcmask 64512  }
  0x4a   :  { %482 = vmatprep.subr.bf16.mxu1 %v625_v0  ;;  %452 = vmatprep.subr.mxu0 %v626_v1  ;;  %v86_v2 = vld [vmem:[#allocation8] sm:$0xff]  ;;  %v87_v3 = vld [vmem:[#allocation8 + $0x8] sm:$0xff]  ;;  %v90_v4 = vld [vmem:[%s761_s3] sm:$0xff]  ;;  %vm165_vm2 = vcmask 195584   ;;  %vm259_vm3 = vcmask 261120   ;;  %v336_v29 = vstv %s766_s8  ;;  %s628_s21 = smov [#allocation11]  }
  0x4b   :  { %454 = vmatprep.mubr.msk.f32.mxu0 %vm627_vm0, %v626_v1  ;;  %463 = vmatprep.mubr.msk.f32.mxu1 %vm627_vm0, %v626_v1  ;;  %v483_v5 = vpack.c.bf16 %v87_v3, %v86_v2  ;;  %v89_v6 = vld [vmem:[#allocation6] sm:$0xff]  ;;  %v88_v7 = vld [vmem:[#allocation8 + $0x10] sm:$0xff]  ;;  %v249_v10 = vld [vmem:[#allocation9 + $0x8] sm:$0xff]  ;;  %s421_s0 = sshll.u32 %s628_s21, 4  ;;  %vm413_vm4 = vcmask 57344   ;;  %s422_s0 = int_to_ptr.vmem [resolvable:$true] %s421_s0 }
  0x4c   :  { %453 = vmatpush3.msra.mxu0 %v90_v4  ;;  %v85_v8 = vld [vmem:[#allocation3] sm:$0xff]  ;;  %v248_v9 = vld [vmem:[#allocation9] sm:$0xff]  ;;  %v250_v12 = vld [vmem:[#allocation9 + $0x10] sm:$0xff]  ;;  %s593_s12 = scalar_lea.vmem %s422_s0, 32  ;;  %p594_p5 = scmp.lt.s32.totalorder %s422_s0, %s422_s0 }
  0x4d   :  { %455 = vmatmul.mubr.msk.f32.vlgmr.msra.gmra.mrb[0].mxu0 %vm91_vm1, %v89_v6  ;;  %485 = vmatprep.subr.bf16.mxu0 %v625_v0  ;;  %v486_v11 = vpack.c.bf16 %v249_v10, %v248_v9  ;;  %v251_v13 = vld [vmem:[#allocation9 + $0x18] sm:$0xff] }
  0x4e   :  { %484 = vmatpush3.bf16.msra.mxu1 %v483_v5  ;;  %474 = vmatprep.mubr.msk.f32.mxu0 %vm627_vm0, %v626_v1  ;;  %v489_v14 = vpack.c.bf16 %v251_v13, %v250_v12  ;;  %v434_v18 = vld [vmem:[%s762_s4] ss:$0 sm:$0xff] }
  0x4f   :  { %461 = vmatprep.subr.mxu1 %v626_v1  ;;  %487 = vmatpush3.bf16.msra.mxu0 %v486_v11  ;;  %v435_v23 = vld [vmem:[%s764_s6] ss:$0 sm:$0xff]  ;;  %s589_s6 = scalar_lea.vmem %s422_s0, 16 }
  0x50   :  { %488 = vmatprep.subr.bf16.mxu0 %v625_v0  ;;  %v334_v28 = vld [vmem:[%s765_s7] sm:$0x1]  ;;  %p590_p4 = scmp.ne.s32.totalorder %s422_s0, %s589_s6  ;;  %p595_p6 = scmp.lt.s32.totalorder %s593_s12, %s589_s6 }
  0x52   :  { %462 = vmatpush3.msra.mxu1 %v88_v7  ;;  %p596_p7 = por %p595_p6, %p594_p5 }
  0x53   :  { %464 = vmatmul.mubr.msk.f32.vlgmr.msra.gmra.mrb[0].mxu1 %vm165_vm2, %v85_v8  ;;  %477 = vmatprep.subr.mxu1 %v626_v1 }
  0x54   :  { %479 = vmatprep.mubr.msk.f32.mxu1 %vm627_vm0, %v626_v1  ;;  %490 = vmatpush3.bf16.msra.mxu0 %v489_v14  ;;  %p597_p8 = pnand %p596_p7, %p590_p4 }
 0x120   :  { %v161_v15 = vpop.f32.mrb[0].mxu0 }
 0x121   :  { %v456_v16 = vpop.f32.mrb[1].mxu0 }
 0x126   :  { %v235_v17 = vpop.f32.mrb[0].mxu1 }
 0x127   :  { %v236_v19 = vadd.f32 %v235_v17, %v161_v15  ;;  %v465_v20 = vpop.f32.mrb[1].mxu1 }
 0x129   :  { %v246_v21 = vadd.f32 %v434_v18, %v236_v19 }
 0x12b   :  { %v247_v22 = vmax.f32 %v246_v21, 0.0 }
 0x12d   :  { %475 = vmatmul.mubr.msk.f32.vlgmr.msra.gmra.mrb[2].mxu0 %vm259_vm3, %v247_v22 }
 0x200   :  { %v329_v24 = vpop.f32.mrb[2].mxu0 }
 0x201   :  { %v330_v25 = vadd.f32 %v435_v23, %v329_v24  ;;  %v476_v26 = vpop.f32.mrb[3].mxu0 }
 0x203   :  { %v333_v27 = vmax.f32 %v330_v25, 0.0 }
 0x205   :  { %478 = vmatpush3.xpose.msk.msra.mxu1 %vm259_vm3, %v333_v27 }
 0x208   :  { %480 = vmatmul.mubr.msk.f32.vlgmr.msra.gmra.mrb[2].mxu1 %vm259_vm3, %v334_v28 }
 0x2db   :  { %v409_v30 = vpop.f32.mrb[2].mxu1 }
 0x2dc   :  { %v410_v31 = vadd.f32 %v409_v30, %v336_v29  ;;  %v481_v32 = vpop.f32.mrb[3].mxu1 }
 0x2de   :  { %414 = vst.msk [vmem:[#allocation11] sm:$0x1] %vm413_vm4, %v410_v31 }
 0x2df   :  { %600 = shalt.err (!%p597_p8)
}
 0x2e0   :  { %s601_s8 = scalar_lea.hbm %s767_s9, 16 }
 0x2e1   :  { %p602_p9 = scmp.ne.s32.totalorder %s767_s9, %s601_s8  ;;  %p605_p10 = scmp.lt.u32.totalorder %s601_s8, %s767_s9 }
 0x2e3   :  { %p607_p11 = pnand %p605_p10, %p602_p9 }
 0x2e5   :  { %610 = shalt.err (!%p607_p11)
}
 0x2e6   :  { %424 = dma.vmem_to_hbm [thread:$0]  %s422_s0, 16, %s767_s9, [#allocation5]  }
 0x2e7   :  { %617 = dma.done.wait [#allocation5], 16  }
 0x2e8   :  { %618 = vsyncadd [#allocation5], 4294967280 }
 0x2e9   :  { %428 = vsyncpa [#allocation4], 1 }
 0x2ea   :  { %429 = vsyncpa [#allocation7], 1 }
 0x2eb   :  { %430 = vsyncpa [#allocation10], 1 }
 0x2ec   :  { %431 = vsyncpa [#allocation5], 1 }

</bundles_post_ra>
